<compile_context>
chip_gen: v7x
topology: tpu7x:2x2x1
jax: 0.10.0
libtpu: 0.0.40
codegen_flags: <defaults>
</compile_context>

<pallas_src>
import math

import numpy as np
import jax
import jax.numpy as jnp
from jax import lax
from jax.experimental import pallas as pl
from jax.experimental.pallas import tpu as pltpu


def _round_up(a, b):
    return (a + b - 1) // b * b


def _pick_tile_rows(n_rows, row_bytes, row_mult):
    """Rows per grid step: ~4 MiB of output per buffer, but keep >=2 steps."""
    target = ((4 << 20) // max(row_bytes, 1)) // row_mult * row_mult
    target = max(target, row_mult)
    # Keep at least two grid steps when there is enough work so the "parallel"
    # grid axis can be sharded across v7x's two TensorCores.
    half = _round_up(max((n_rows + 1) // 2, 1), row_mult)
    return max(row_mult, min(target, half))


def _pos_emb_kernel(x_ref, fe_ref, ph_ref, o_ref):
    # x_ref : (R, k)  k consecutive positions packed per row
    # fe_ref: (k, W)  block-diagonal frequency table, W = k*dim (multiple of 128)
    # ph_ref: (1, W)  0 on sin lanes, pi/2 on cos lanes (cos t == sin(t + pi/2))
    # o_ref : (R, W)  lane-dense -> wide unmasked vector stores
    xv = x_ref[...]
    fev = fe_ref[...]
    k = xv.shape[1]
    if k == 1:
        emb = xv * fev                                  # simple broadcast multiply
    else:
        # Single MXU matmul replaces the k-term VALU multiply-add; every fe
        # column has exactly one nonzero, so this is one product per output
        # element.  HIGHEST keeps full f32 accuracy for large timesteps.
        emb = jnp.dot(xv, fev, preferred_element_type=jnp.float32,
                      precision=lax.Precision.HIGHEST)
    o_ref[...] = jnp.sin(emb + ph_ref[...]).astype(o_ref.dtype)


def sinusoidal_pos_emb(x, dim, out_dtype=jnp.float32):
    assert dim % 2 == 0 and dim >= 4, "dim must be even and >= 4 (ref divides by dim//2 - 1)"
    half = dim // 2
    out_dtype = jnp.dtype(out_dtype)
    orig_shape = x.shape
    n = int(np.prod(orig_shape)) if orig_shape else 1
    if n == 0:
        return jnp.zeros(orig_shape + (dim,), out_dtype)

    # ---- packing geometry: k positions per kernel row so W = k*dim is a
    # multiple of 128 lanes (k <= 64 for any even dim -> no masked-store path).
    k = 128 // math.gcd(dim, 128)
    w = k * dim
    n_rows = -(-n // k)

    out_isz = out_dtype.itemsize
    row_mult = 16 if out_isz < 4 else 8              # bf16 sublane packing wants x16
    tile_rows = _pick_tile_rows(n_rows, w * out_isz, row_mult)
    grid_steps = -(-n_rows // tile_rows)

    # Pad only the tiny input to full grid coverage; the (n_rows, W) output is
    # left unpadded and Pallas clips the final partial block on writeback.
    x_pad = jnp.pad(x.reshape(-1).astype(jnp.float32),
                    (0, grid_steps * tile_rows * k - n))
    x_pad = x_pad.reshape(grid_steps * tile_rows, k)

    # ---- constant tables, built with numpy (compile-time constants).
    scale = math.log(10000.0) / (half - 1)
    freqs = np.exp(np.arange(half, dtype=np.float32) * np.float32(-scale))
    c = np.arange(w)
    d = c % dim
    dd = np.where(d < half, d, d - half)
    freq_lane = freqs[dd].astype(np.float32)                                  # (w,)
    fe = np.where((c // dim)[None, :] == np.arange(k)[:, None],
                  freq_lane[None, :], np.float32(0.0)).astype(np.float32)     # (k, w)
    ph = np.where(d < half, np.float32(0.0),
                  np.float32(np.pi / 2.0)).astype(np.float32)[None, :]        # (1, w)
    fe_dev = jnp.asarray(fe)
    ph_dev = jnp.asarray(ph)

    vmem_limit = (2 * tile_rows * w * out_isz        # double-buffered output tiles
                  + 2 * tile_rows * k * 4            # double-buffered x tiles
                  + 2 * (k * w + w) * 4              # freq / phase tables
                  + (2 << 20))                       # headroom / compiler scratch
    vmem_limit = int(min(max(vmem_limit, 4 << 20), 32 << 20))

    compiler_params = pltpu.CompilerParams(
        dimension_semantics=("parallel",),
        vmem_limit_bytes=vmem_limit)

    cost = pl.CostEstimate(
        flops=int(n_rows * w * (2 * k + 1)),
        transcendentals=int(n_rows * w),
        bytes_accessed=int(n_rows * w * out_isz + grid_steps * tile_rows * k * 4
                           + (k * w + w) * 4))

    def run(single_buffer_tables):
        kw = {"pipeline_mode": pl.Buffered(1)} if single_buffer_tables else {}
        in_specs = [
            pl.BlockSpec((tile_rows, k), lambda i: (i, 0)),
            pl.BlockSpec((k, w), lambda i: (0, 0), **kw),
            pl.BlockSpec((1, w), lambda i: (0, 0), **kw),
        ]
        return pl.pallas_call(
            _pos_emb_kernel,
            out_shape=jax.ShapeDtypeStruct((n_rows, w), out_dtype),
            grid=(grid_steps,),
            in_specs=in_specs,
            out_specs=pl.BlockSpec((tile_rows, w), lambda i: (i, 0)),
            compiler_params=compiler_params,
            cost_estimate=cost,
        )(x_pad, fe_dev, ph_dev)

    try:
        # Constant-index tables only need a single resident VMEM buffer.
        out = run(True)
    except Exception:
        out = run(False)   # fall back to default double-buffering

    out = out.reshape(n_rows * k, dim)       # free bitcast (row-major compatible)
    if n_rows * k != n:                      # only when n % k != 0: trims < k rows
        out = out[:n]
    return out.reshape(orig_shape + (dim,))


def _reference(x, dim):
    half = dim // 2
    scale = math.log(10000.0) / (half - 1)
    freqs = jnp.exp(jnp.arange(half, dtype=jnp.float32) * jnp.float32(-scale))
    emb = x[..., None].astype(jnp.float32) * freqs
    return jnp.concatenate([jnp.sin(emb), jnp.cos(emb)], axis=-1)


if __name__ == "__main__":
    key = jax.random.PRNGKey(0)
    B, S = 2, 8
    x = jax.random.normal(key, (B, S), dtype=jnp.float32) * 5.0

    # dim = 32: k = 4 positions per row, W = 128.
    DIM = 32
    out = jax.block_until_ready(sinusoidal_pos_emb(x, DIM))
    ref = _reference(x, DIM)
    assert out.shape == (B, S, DIM), out.shape
    assert jnp.allclose(out, ref, atol=1e-5, rtol=1e-5), \
        float(jnp.max(jnp.abs(out - ref)))

    # dim = 20: previously the masked-store fallback; now the same lane-dense
    # packed + MXU path with k = 32, W = 640.
    DIM2 = 20
    out2 = jax.block_until_ready(sinusoidal_pos_emb(x, DIM2))
    ref2 = _reference(x, DIM2)
    assert out2.shape == (B, S, DIM2), out2.shape
    assert jnp.allclose(out2, ref2, atol=1e-5, rtol=1e-5), \
        float(jnp.max(jnp.abs(out2 - ref2)))

    print("KERNEL_OK")
</pallas_src>

<mosaic_0001>
module attributes {stable_mosaic.version = 11 : i64} {
  func.func @_pos_emb_kernel(%arg0: i32, %arg1: memref<8x4xf32, #tpu.memory_space<vmem>>, %arg2: memref<4x128xf32, #tpu.memory_space<vmem>>, %arg3: memref<1x128xf32, #tpu.memory_space<vmem>>, %arg4: memref<8x128xf32, #tpu.memory_space<vmem>>) attributes {dimension_semantics = [#tpu.dimension_semantics<parallel>], iteration_bounds = array<i64: 1>, scalar_prefetch = 0 : i64, scratch_operands = 0 : i64, tpu.core_type = #tpu.core_type<tc>, window_params = [{transform_indices = @transform_0, window_bounds = array<i64: 8, 4>}, {pipeline_mode = #tpu.pipeline_mode<synchronous>, transform_indices = @transform_1, window_bounds = array<i64: 4, 128>}, {pipeline_mode = #tpu.pipeline_mode<synchronous>, transform_indices = @transform_2, window_bounds = array<i64: 1, 128>}, {transform_indices = @transform_3, window_bounds = array<i64: 8, 128>}]} {
    %c0 = arith.constant 0 : index
    %c0_0 = arith.constant 0 : index
    %0 = vector.load %arg1[%c0, %c0_0] : memref<8x4xf32, #tpu.memory_space<vmem>>, vector<8x4xf32>
    %c0_1 = arith.constant 0 : index
    %c0_2 = arith.constant 0 : index
    %1 = vector.load %arg2[%c0_1, %c0_2] : memref<4x128xf32, #tpu.memory_space<vmem>>, vector<4x128xf32>
    %cst = arith.constant dense<0.000000e+00> : vector<8x128xf32>
    %2 = tpu.matmul %0, %1, %cst {dimension_numbers = #tpu.dot_dimension_numbers<[1], [0], [0], [1], [0, 0, 1, 1], [], []>, precision = #tpu.contract_precision<fp32>} : vector<8x4xf32>, vector<4x128xf32>, vector<8x128xf32> -> vector<8x128xf32>
    %c0_3 = arith.constant 0 : index
    %c0_4 = arith.constant 0 : index
    %3 = vector.load %arg3[%c0_3, %c0_4] : memref<1x128xf32, #tpu.memory_space<vmem>>, vector<1x128xf32>
    %4 = vector.broadcast %3 : vector<1x128xf32> to vector<8x128xf32>
    %5 = arith.addf %2, %4 : vector<8x128xf32>
    %6 = math.sin %5 : vector<8x128xf32>
    %c0_5 = arith.constant 0 : index
    %c0_6 = arith.constant 0 : index
    %7 = vector.load %arg4[%c0_5, %c0_6] : memref<8x128xf32, #tpu.memory_space<vmem>>, vector<8x128xf32>
    tpu.vector_store %arg4[%c0_5, %c0_6], %6 {strides = array<i32>} : memref<8x128xf32, #tpu.memory_space<vmem>>, vector<8x128xf32>,
    return
  }
  func.func @transform_0(%arg0: i32) -> (i32, i32) {
    %c0_i32 = arith.constant 0 : i32
    %c0_i32_0 = arith.constant 0 : i32
    return %arg0, %c0_i32 : i32, i32
  }
  func.func @transform_1(%arg0: i32) -> (i32, i32) {
    %c0_i32 = arith.constant 0 : i32
    %c0_i32_0 = arith.constant 0 : i32
    %c0_i32_1 = arith.constant 0 : i32
    return %c0_i32, %c0_i32_0 : i32, i32
  }
  func.func @transform_2(%arg0: i32) -> (i32, i32) {
    %c0_i32 = arith.constant 0 : i32
    %c0_i32_0 = arith.constant 0 : i32
    %c0_i32_1 = arith.constant 0 : i32
    return %c0_i32, %c0_i32_0 : i32, i32
  }
  func.func @transform_3(%arg0: i32) -> (i32, i32) {
    %c0_i32 = arith.constant 0 : i32
    %c0_i32_0 = arith.constant 0 : i32
    return %arg0, %c0_i32 : i32, i32
  }
}

module attributes {stable_mosaic.version = 11 : i64} {
  func.func @_pos_emb_kernel(%arg0: i32, %arg1: memref<8x4xf32, #tpu.memory_space<vmem>>, %arg2: memref<4x128xf32, #tpu.memory_space<vmem>>, %arg3: memref<1x128xf32, #tpu.memory_space<vmem>>, %arg4: memref<8x128xf32, #tpu.memory_space<vmem>>) attributes {dimension_semantics = [#tpu.dimension_semantics<parallel>], iteration_bounds = array<i64: 1>, scalar_prefetch = 0 : i64, scratch_operands = 0 : i64, tpu.core_type = #tpu.core_type<tc>, window_params = [{transform_indices = @transform_0, window_bounds = array<i64: 8, 4>}, {pipeline_mode = #tpu.pipeline_mode<synchronous>, transform_indices = @transform_1, window_bounds = array<i64: 4, 128>}, {pipeline_mode = #tpu.pipeline_mode<synchronous>, transform_indices = @transform_2, window_bounds = array<i64: 1, 128>}, {transform_indices = @transform_3, window_bounds = array<i64: 8, 128>}]} {
    %c0 = arith.constant 0 : index
    %c0_0 = arith.constant 0 : index
    %0 = vector.load %arg1[%c0, %c0_0] : memref<8x4xf32, #tpu.memory_space<vmem>>, vector<8x4xf32>
    %c0_1 = arith.constant 0 : index
    %c0_2 = arith.constant 0 : index
    %1 = vector.load %arg2[%c0_1, %c0_2] : memref<4x128xf32, #tpu.memory_space<vmem>>, vector<4x128xf32>
    %cst = arith.constant dense<0.000000e+00> : vector<8x128xf32>
    %2 = tpu.matmul %0, %1, %cst {dimension_numbers = #tpu.dot_dimension_numbers<[1], [0], [0], [1], [0, 0, 1, 1], [], []>, precision = #tpu.contract_precision<fp32>} : vector<8x4xf32>, vector<4x128xf32>, vector<8x128xf32> -> vector<8x128xf32>
    %c0_3 = arith.constant 0 : index
    %c0_4 = arith.constant 0 : index
    %3 = vector.load %arg3[%c0_3, %c0_4] : memref<1x128xf32, #tpu.memory_space<vmem>>, vector<1x128xf32>
    %4 = vector.broadcast %3 : vector<1x128xf32> to vector<8x128xf32>
    %5 = arith.addf %2, %4 : vector<8x128xf32>
    %6 = math.sin %5 : vector<8x128xf32>
    %c0_5 = arith.constant 0 : index
    %c0_6 = arith.constant 0 : index
    %7 = vector.load %arg4[%c0_5, %c0_6] : memref<8x128xf32, #tpu.memory_space<vmem>>, vector<8x128xf32>
    tpu.vector_store %arg4[%c0_5, %c0_6], %6 {strides = array<i32>} : memref<8x128xf32, #tpu.memory_space<vmem>>, vector<8x128xf32>,
    return
  }
  func.func @transform_0(%arg0: i32) -> (i32, i32) {
    %c0_i32 = arith.constant 0 : i32
    %c0_i32_0 = arith.constant 0 : i32
    return %arg0, %c0_i32 : i32, i32
  }
  func.func @transform_1(%arg0: i32) -> (i32, i32) {
    %c0_i32 = arith.constant 0 : i32
    %c0_i32_0 = arith.constant 0 : i32
    %c0_i32_1 = arith.constant 0 : i32
    return %c0_i32, %c0_i32_0 : i32, i32
  }
  func.func @transform_2(%arg0: i32) -> (i32, i32) {
    %c0_i32 = arith.constant 0 : i32
    %c0_i32_0 = arith.constant 0 : i32
    %c0_i32_1 = arith.constant 0 : i32
    return %c0_i32, %c0_i32_0 : i32, i32
  }
  func.func @transform_3(%arg0: i32) -> (i32, i32) {
    %c0_i32 = arith.constant 0 : i32
    %c0_i32_0 = arith.constant 0 : i32
    return %arg0, %c0_i32 : i32, i32
  }
}

</mosaic_0001>

<bundles_post_ra>
// kernel: tpu_custom_call.1
= control target key start
LH: loop header
LB: loop body
LE: loop exit
PB: predicated region body
PF: predicated region fallthrough
CT: control target
= control target key end

     0   :  { %vm28_vm0 = vcmask 1043456   ;;  %v699_v2 = vmov 0.0   ;;  %vm700_vm1 = vmmov 0   ;;  %vm24_vm2 = vcmask 31744   ;;  %s778_s0 = inlined_call_operand.vmem [shape: f32[8,4], index: 0, kind: input, shape index: {}]   ;;  %s779_s1 = inlined_call_operand.vmem [shape: f32[4,128], index: 1, kind: input, shape index: {}]   ;;  %s780_s2 = inlined_call_operand.vmem [shape: f32[1,128], index: 2, kind: input, shape index: {}]   ;;  %s781_s3 = inlined_call_operand.hbm [shape: f32[4,128], index: 3, kind: output, shape index: {}]  }
   0x1   :  { %v16_v0 = vld [vmem:[%s779_s1] sm:$0xf]  ;;  %631 = vmatprep.subr.mxu0 %v699_v2  ;;  %633 = vmatprep.mubr.msk.f32.mxu0 %vm700_vm1, %v699_v2 }
   0x2   :  { %v15_v1 = vld [vmem:[%s778_s0] sm:$0xff]  ;;  %v30_v3 = vsel %vm28_vm0, %v16_v0, 0 }
   0x3   :  { %8 = vsyncpa [#allocation3], 0  ;;  %v33_v4 = vand.u32 4294901760, %v30_v3  ;;  %v26_v5 = vsel %vm24_vm2, %v15_v1, 0  ;;  %616 = vmatprep.subr.mxu1 %v699_v2  ;;  %618 = vmatprep.mubr.msk.f32.mxu1 %vm700_vm1, %v699_v2  ;;  %v599_v17 = vld [vmem:[%s780_s2] ss:$0 sm:$0xff] }
   0x4   :  { %v98_v6 = vand.u32 4294901760, %v26_v5  ;;  %v701_v32 = vmov 683565275   ;;  %v702_v34 = vmov 2475754826  }
   0x5   :  { %v110_v7 = vsub.f32 %v30_v3, %v33_v4  ;;  %632 = vmatpush3.msra.mxu0 %v33_v4  ;;  %617 = vmatpush3.msra.mxu1 %v33_v4  ;;  %v703_v37 = vmov 2131351028   ;;  %v704_v40 = vmov 2102212464   ;;  %v705_v43 = vmov 920167782  }
   0x6   :  { %v99_v8 = vsub.f32 %v26_v5, %v98_v6  ;;  %621 = vmatprep.subr.mxu1 %v699_v2  ;;  %636 = vmatprep.subr.mxu0 %v699_v2  ;;  %v706_v46 = vmov 1326507024  }
   0x7   :  { %v111_v9 = vand.u32 4294901760, %v110_v7 }
   0x8   :  { %v100_v10 = vand.u32 4294901760, %v99_v8 }
   0x9   :  { %v112_v11 = vsub.f32 %v110_v7, %v111_v9 }
   0xa   :  { %634 = vmatmul.mubr.f32.vlgmr.msra.gmra.mrb[0].mxu0 %v100_v10  ;;  %v101_v12 = vsub.f32 %v99_v8, %v100_v10 }
   0xb   :  { %v113_v13 = vand.u32 4294901760, %v112_v11  ;;  %637 = vmatpush3.msra.mxu0 %v111_v9  ;;  %638 = vmatprep.mubr.msk.f32.mxu0 %vm700_vm1, %v699_v2 }
   0xc   :  { %v102_v14 = vand.u32 4294901760, %v101_v12  ;;  %641 = vmatprep.subr.mxu0 %v699_v2 }
   0xe   :  { %619 = vmatmul.mubr.f32.vlgmr.msra.gmra.mrb[0].mxu1 %v102_v14 }
   0xf   :  { %622 = vmatpush3.msra.mxu1 %v113_v13  ;;  %623 = vmatprep.mubr.msk.f32.mxu1 %vm700_vm1, %v699_v2 }
  0x10   :  { %626 = vmatprep.subr.mxu1 %v699_v2 }
  0x12   :  { %639 = vmatmul.mubr.f32.vlgmr.msra.gmra.mrb[0].mxu0 %v98_v6 }
  0x13   :  { %642 = vmatpush3.msra.mxu0 %v33_v4  ;;  %643 = vmatprep.mubr.msk.f32.mxu0 %vm700_vm1, %v699_v2 }
  0x16   :  { %624 = vmatmul.mubr.f32.vlgmr.msra.gmra.mrb[0].mxu1 %v98_v6 }
  0x17   :  { %627 = vmatpush3.msra.mxu1 %v110_v7  ;;  %628 = vmatprep.mubr.msk.f32.mxu1 %vm700_vm1, %v699_v2 }
  0x1a   :  { %644 = vmatmul.mubr.f32.vlgmr.msra.gmra.mrb[0].mxu0 %v98_v6 }
  0x1e   :  { %629 = vmatmul.mubr.f32.vlgmr.msra.gmra.mrb[0].mxu1 %v99_v8 }
  0xed   :  { %v474_v15 = vpop.f32.mrb[0].mxu0 }
  0xee   :  { %v645_v16 = vpop.f32.mrb[1].mxu0 }
  0xf1   :  { %v254_v18 = vpop.f32.mrb[0].mxu1 }
  0xf2   :  { %v646_v19 = vadd.f32 %v599_v17, %v254_v18  ;;  %v630_v20 = vpop.f32.mrb[1].mxu1 }
  0xf4   :  { %v745_v21 = vadd.f32 %v646_v19, %v474_v15 }
  0xf6   :  { %v481_v22 = vand.u32 2139095040, %v745_v21  ;;  %v478_v26 = vand.u32 2147483647, %v745_v21  ;;  %vm480_vm10 = vcmp.lt.s32.totalorder %v745_v21, 0  ;;  %vm570_vm15 = vweird.f32 %v745_v21 }
  0xf8   :  { %v482_v23 = vshrl.u32 %v481_v22, 23  ;;  %v485_v29 = vand.u32 8388607, %v478_v26  ;;  %vm479_vm11 = vcmp.le.f32.partialorder %v478_v26, 0.7853982 }
  0xfa   :  { %v600_v24 = vadd.s32 4294967169, %v482_v23  ;;  %v486_v48 = vor.u32 8388608, %v485_v29 }
  0xfc   :  { %v488_v25 = vadd.s32 1, %v600_v24  ;;  %v526_v62 = vshll.u32 %v486_v48, 8 }
  0xfe   :  { %vm489_vm3 = vcmp.gt.s32.totalorder %v488_v25, 0 }
  0xff   :  { %v490_v27 = vsel %vm489_vm3, %v488_v25, 0 }
 0x100   :  { %v492_v28 = vand.u32 31, %v490_v27  ;;  %v491_v31 = vshrl.u32 %v490_v27, 5 }
 0x102   :  { %v493_v30 = vsub.s32 32, %v492_v28  ;;  %v495_v33 = vshll.u32 %v701_v32, %v492_v28  ;;  %v498_v35 = vshll.u32 %v702_v34, %v492_v28  ;;  %v501_v39 = vshll.u32 %v703_v37, %v492_v28 }
 0x103   :  { %v504_v42 = vshll.u32 %v704_v40, %v492_v28  ;;  %v507_v45 = vshll.u32 %v705_v43, %v492_v28  ;;  %vm510_vm4 = vcmp.lt.s32.totalorder %v491_v31, 1  ;;  %vm513_vm5 = vcmp.lt.s32.totalorder %v491_v31, 4 }
 0x104   :  { %v496_v36 = vshrl.u32 %v702_v34, %v493_v30  ;;  %v499_v38 = vshrl.u32 %v703_v37, %v493_v30  ;;  %v502_v41 = vshrl.u32 %v704_v40, %v493_v30  ;;  %v505_v44 = vshrl.u32 %v705_v43, %v493_v30 }
 0x105   :  { %v508_v47 = vshrl.u32 %v706_v46, %v493_v30  ;;  %v494_v57 = vshrl.u32 %v701_v32, %v493_v30  ;;  %vm512_vm6 = vcmp.lt.s32.totalorder %v491_v31, 3  ;;  %vm511_vm7 = vcmp.lt.s32.totalorder %v491_v31, 2 }
 0x106   :  { %v497_v49 = vor.u32 %v496_v36, %v495_v33  ;;  %v500_v50 = vor.u32 %v499_v38, %v498_v35  ;;  %v503_v51 = vor.u32 %v502_v41, %v501_v39  ;;  %v506_v52 = vor.u32 %v505_v44, %v504_v42 }
 0x107   :  { %v509_v53 = vor.u32 %v508_v47, %v507_v45 }
 0x108   :  { %v515_v54 = vsel %vm513_vm5, %v503_v51, 2102212464  ;;  %v518_v55 = vsel %vm510_vm4, %v497_v49, %v500_v50  ;;  %v522_v56 = vsel %vm510_vm4, %v500_v50, %v503_v51  ;;  %v519_v58 = vsel %vm513_vm5, %v506_v52, 920167782 }
 0x109   :  { %v523_v59 = vsel %vm513_vm5, %v509_v53, 1326507024  ;;  %v520_v60 = vsel %vm512_vm6, %v503_v51, %v519_v58  ;;  %v514_v63 = vsel %vm510_vm4, %v494_v57, %v497_v49  ;;  %v516_v0 = vsel %vm512_vm6, %v500_v50, %v515_v54 }
 0x10a   :  { %v524_v61 = vsel %vm512_vm6, %v506_v52, %v523_v59  ;;  %v521_v1 = vsel %vm511_vm7, %v518_v55, %v520_v60  ;;  %v517_v7 = vsel %vm511_vm7, %v514_v63, %v516_v0 }
 0x10b   :  { %v525_v2 = vsel %vm511_vm7, %v522_v56, %v524_v61  ;;  %v754_v5 = vmul.u32.u64.low %v526_v62, %v521_v1  ;;  %v755_v6 = vmul.u32.u64.high %v526_v62, %v521_v1, %v754_v5  ;;  %v533_v9 = vmul.u32 %v526_v62, %v517_v7 }
 0x10c   :  { %v751_v3 = vmul.u32.u64.low %v526_v62, %v525_v2  ;;  %v752_v4 = vmul.u32.u64.high %v526_v62, %v525_v2, %v751_v3 }
 0x10d   :  { %v536_v8 = vadd.s32 1, %v755_v6 }
 0x10e   :  { %vm535_vm8 = vc.u32 %v752_v4, %v754_v5  ;;  %v534_v22 = vadd.s32 %v754_v5, %v752_v4 }
 0x10f   :  { %v537_v10 = vsel %vm535_vm8, %v536_v8, %v755_v6 }
 0x110   :  { %v538_v11 = vadd.s32 %v537_v10, %v533_v9 }
 0x112   :  { %v539_v12 = vadd.s32 536870912, %v538_v11 }
 0x114   :  { %v540_v13 = vshrl.u32 %v539_v12, 30 }
 0x116   :  { %v541_v14 = vshll.u32 %v540_v13, 30  ;;  %v564_v35 = vsub.s32 4, %v540_v13 }
 0x118   :  { %v542_v15 = vsub.s32 %v538_v11, %v541_v14  ;;  %v565_v38 = vsel %vm480_vm10, %v564_v35, %v540_v13 }
 0x119   :  { %v567_v40 = vsel %vm479_vm11, 0, %v565_v38 }
 0x11a   :  { %v544_v16 = vsub.s32 0, %v542_v15  ;;  %v571_v41 = vadd.s32 3, %v567_v40 }
 0x11c   :  { %v601_v17 = vmin.u32 %v544_v16, %v542_v15  ;;  %v572_v42 = vand.u32 3, %v571_v41 }
 0x11e   :  { %v546_v18 = vclz %v601_v17  ;;  %vm577_vm12 = vcmp.eq.s32.totalorder %v572_v42, 2  ;;  %vm574_vm13 = vcmp.eq.s32.totalorder %v572_v42, 0  ;;  %vm573_vm14 = vcmp.lt.s32.totalorder %v572_v42, 2 }
 0x120   :  { %v602_v19 = vadd.s32 4294967294, %v546_v18 }
 0x122   :  { %vm603_vm9 = vcmp.lt.s32.totalorder %v602_v19, 0 }
 0x123   :  { %v549_v20 = vsel %vm603_vm9, 0, %v602_v19 }
 0x124   :  { %v550_v23 = vsub.s32 32, %v549_v20  ;;  %v554_v24 = vsub.s32 4294967266, %v549_v20  ;;  %v551_v25 = vshll.u32 %v542_v15, %v549_v20 }
 0x126   :  { %v552_v27 = vshrl.u32 %v534_v22, %v550_v23  ;;  %v555_v28 = vadd.s32 127, %v554_v24 }
 0x128   :  { %v553_v29 = vor.u32 %v552_v27, %v551_v25  ;;  %v556_v30 = vshll.u32 %v555_v28, 23 }
 0x12a   :  { %v557_v31 = vor.u32 4788187, %v556_v30  ;;  %v560_v33 = vcvt.s32.f32 %v553_v29 }
 0x12c   :  { %v558_v32 = vand.u32 2147483647, %v557_v31 }
 0x12e   :  { %v561_v34 = vmul.f32 %v560_v33, %v558_v32 }
 0x130   :  { %v562_v36 = vxor.u32 2147483648, %v561_v34 }
 0x132   :  { %v563_v37 = vsel %vm480_vm10, %v562_v36, %v561_v34 }
 0x133   :  { %v566_v39 = vsel %vm479_vm11, %v745_v21, %v563_v37 }
 0x134   :  { %671 = vcosq.f32 %v566_v39 }
 0x135   :  { %673 = vsinq.f32 %v566_v39 }
 0x13e   :  { %v672_v43 = vpop.eup %671 }
 0x13f   :  { %v674_v44 = vpop.eup %673  ;;  %v578_v45 = vxor.u32 2147483648, %v672_v43 }
 0x140   :  { %v575_v46 = vxor.u32 2147483648, %v674_v44 }
 0x141   :  { %v579_v47 = vsel %vm577_vm12, %v578_v45, %v674_v44 }
 0x142   :  { %v576_v48 = vsel %vm574_vm13, %v672_v43, %v575_v46 }
 0x143   :  { %v580_v26 = vsel %vm573_vm14, %v576_v48, %v579_v47 }
 0x144   :  { %v581_v49 = vsel %vm570_vm15, nan, %v580_v26 }
 0x145   :  { %582 = vst [vmem:[#allocation2] sm:$0xff] %v581_v49 }
 0x146   :  { %587 = vsyncadd [#allocation3], 64  ;;  %s707_s2 = smov [#allocation2]  }
 0x147   :  { %s588_s16 = sshll.u32 %s707_s2, 4  ;;  %s589_s16 = int_to_ptr.vmem [resolvable:$true] %s588_s16 }
 0x148   :  { %s675_s17 = scalar_lea.vmem %s589_s16, 64  ;;  %s679_s18 = scalar_lea.vmem %s589_s16, 128 }
 0x149   :  { %p676_p0 = scmp.ne.s32.totalorder %s589_s16, %s675_s17  ;;  %p680_p1 = scmp.lt.s32.totalorder %s589_s16, %s589_s16 }
 0x14a   :  { %p681_p2 = scmp.lt.s32.totalorder %s679_s18, %s675_s17 }
 0x14c   :  { %p682_p3 = por %p681_p2, %p680_p1 }
 0x14e   :  { %p683_p4 = pnand %p682_p3, %p676_p0 }
 0x150   :  { %686 = shalt.err (!%p683_p4)
}
 0x151   :  { %s687_s21 = scalar_lea.hbm %s781_s3, 64 }
 0x152   :  { %p688_p5 = scmp.ne.s32.totalorder %s781_s3, %s687_s21  ;;  %p691_p6 = scmp.lt.u32.totalorder %s687_s21, %s781_s3 }
 0x154   :  { %p693_p7 = pnand %p691_p6, %p688_p5 }
 0x156   :  { %696 = shalt.err (!%p693_p7)
}
 0x157   :  { %s708_s26 = smov 64   ;;  %s709_s27 = smov 4  }
 0x158   :  { %594 = dma.vmem_to_hbm [thread:$0]  %s589_s16, 64, %s781_s3, [#allocation3], %s708_s26, %s708_s26, %s709_s27  }
 0x159   :  { %697 = dma.done.wait [#allocation3], 128  }
 0x15a   :  { %698 = vsyncadd [#allocation3], 4294967168 }
 0x15b   :  { %598 = vsyncpa [#allocation3], 1 }

// kernel: tpu_custom_call.1
= control target key start
LH: loop header
LB: loop body
LE: loop exit
PB: predicated region body
PF: predicated region fallthrough
CT: control target
= control target key end

     0   :  { %vm28_vm0 = vcmask 1043456   ;;  %v699_v2 = vmov 0.0   ;;  %vm700_vm1 = vmmov 0   ;;  %vm24_vm2 = vcmask 31744   ;;  %s778_s0 = inlined_call_operand.vmem [shape: f32[8,4], index: 0, kind: input, shape index: {}]   ;;  %s779_s1 = inlined_call_operand.vmem [shape: f32[4,128], index: 1, kind: input, shape index: {}]   ;;  %s780_s2 = inlined_call_operand.vmem [shape: f32[1,128], index: 2, kind: input, shape index: {}]   ;;  %s781_s3 = inlined_call_operand.hbm [shape: f32[4,128], index: 3, kind: output, shape index: {}]  }
   0x1   :  { %v16_v0 = vld [vmem:[%s779_s1] sm:$0xf]  ;;  %631 = vmatprep.subr.mxu0 %v699_v2  ;;  %633 = vmatprep.mubr.msk.f32.mxu0 %vm700_vm1, %v699_v2 }
   0x2   :  { %v15_v1 = vld [vmem:[%s778_s0] sm:$0xff]  ;;  %v30_v3 = vsel %vm28_vm0, %v16_v0, 0 }
   0x3   :  { %8 = vsyncpa [#allocation3], 0  ;;  %v33_v4 = vand.u32 4294901760, %v30_v3  ;;  %v26_v5 = vsel %vm24_vm2, %v15_v1, 0  ;;  %616 = vmatprep.subr.mxu1 %v699_v2  ;;  %618 = vmatprep.mubr.msk.f32.mxu1 %vm700_vm1, %v699_v2  ;;  %v599_v17 = vld [vmem:[%s780_s2] ss:$0 sm:$0xff] }
   0x4   :  { %v98_v6 = vand.u32 4294901760, %v26_v5  ;;  %v701_v32 = vmov 683565275   ;;  %v702_v34 = vmov 2475754826  }
   0x5   :  { %v110_v7 = vsub.f32 %v30_v3, %v33_v4  ;;  %632 = vmatpush3.msra.mxu0 %v33_v4  ;;  %617 = vmatpush3.msra.mxu1 %v33_v4  ;;  %v703_v37 = vmov 2131351028   ;;  %v704_v40 = vmov 2102212464   ;;  %v705_v43 = vmov 920167782  }
   0x6   :  { %v99_v8 = vsub.f32 %v26_v5, %v98_v6  ;;  %621 = vmatprep.subr.mxu1 %v699_v2  ;;  %636 = vmatprep.subr.mxu0 %v699_v2  ;;  %v706_v46 = vmov 1326507024  }
   0x7   :  { %v111_v9 = vand.u32 4294901760, %v110_v7 }
   0x8   :  { %v100_v10 = vand.u32 4294901760, %v99_v8 }
   0x9   :  { %v112_v11 = vsub.f32 %v110_v7, %v111_v9 }
   0xa   :  { %634 = vmatmul.mubr.f32.vlgmr.msra.gmra.mrb[0].mxu0 %v100_v10  ;;  %v101_v12 = vsub.f32 %v99_v8, %v100_v10 }
   0xb   :  { %v113_v13 = vand.u32 4294901760, %v112_v11  ;;  %637 = vmatpush3.msra.mxu0 %v111_v9  ;;  %638 = vmatprep.mubr.msk.f32.mxu0 %vm700_vm1, %v699_v2 }
   0xc   :  { %v102_v14 = vand.u32 4294901760, %v101_v12  ;;  %641 = vmatprep.subr.mxu0 %v699_v2 }
   0xe   :  { %619 = vmatmul.mubr.f32.vlgmr.msra.gmra.mrb[0].mxu1 %v102_v14 }
   0xf   :  { %622 = vmatpush3.msra.mxu1 %v113_v13  ;;  %623 = vmatprep.mubr.msk.f32.mxu1 %vm700_vm1, %v699_v2 }
  0x10   :  { %626 = vmatprep.subr.mxu1 %v699_v2 }
  0x12   :  { %639 = vmatmul.mubr.f32.vlgmr.msra.gmra.mrb[0].mxu0 %v98_v6 }
  0x13   :  { %642 = vmatpush3.msra.mxu0 %v33_v4  ;;  %643 = vmatprep.mubr.msk.f32.mxu0 %vm700_vm1, %v699_v2 }
  0x16   :  { %624 = vmatmul.mubr.f32.vlgmr.msra.gmra.mrb[0].mxu1 %v98_v6 }
  0x17   :  { %627 = vmatpush3.msra.mxu1 %v110_v7  ;;  %628 = vmatprep.mubr.msk.f32.mxu1 %vm700_vm1, %v699_v2 }
  0x1a   :  { %644 = vmatmul.mubr.f32.vlgmr.msra.gmra.mrb[0].mxu0 %v98_v6 }
  0x1e   :  { %629 = vmatmul.mubr.f32.vlgmr.msra.gmra.mrb[0].mxu1 %v99_v8 }
  0xed   :  { %v474_v15 = vpop.f32.mrb[0].mxu0 }
  0xee   :  { %v645_v16 = vpop.f32.mrb[1].mxu0 }
  0xf1   :  { %v254_v18 = vpop.f32.mrb[0].mxu1 }
  0xf2   :  { %v646_v19 = vadd.f32 %v599_v17, %v254_v18  ;;  %v630_v20 = vpop.f32.mrb[1].mxu1 }
  0xf4   :  { %v745_v21 = vadd.f32 %v646_v19, %v474_v15 }
  0xf6   :  { %v481_v22 = vand.u32 2139095040, %v745_v21  ;;  %v478_v26 = vand.u32 2147483647, %v745_v21  ;;  %vm480_vm10 = vcmp.lt.s32.totalorder %v745_v21, 0  ;;  %vm570_vm15 = vweird.f32 %v745_v21 }
  0xf8   :  { %v482_v23 = vshrl.u32 %v481_v22, 23  ;;  %v485_v29 = vand.u32 8388607, %v478_v26  ;;  %vm479_vm11 = vcmp.le.f32.partialorder %v478_v26, 0.7853982 }
  0xfa   :  { %v600_v24 = vadd.s32 4294967169, %v482_v23  ;;  %v486_v48 = vor.u32 8388608, %v485_v29 }
  0xfc   :  { %v488_v25 = vadd.s32 1, %v600_v24  ;;  %v526_v62 = vshll.u32 %v486_v48, 8 }
  0xfe   :  { %vm489_vm3 = vcmp.gt.s32.totalorder %v488_v25, 0 }
  0xff   :  { %v490_v27 = vsel %vm489_vm3, %v488_v25, 0 }
 0x100   :  { %v492_v28 = vand.u32 31, %v490_v27  ;;  %v491_v31 = vshrl.u32 %v490_v27, 5 }
 0x102   :  { %v493_v30 = vsub.s32 32, %v492_v28  ;;  %v495_v33 = vshll.u32 %v701_v32, %v492_v28  ;;  %v498_v35 = vshll.u32 %v702_v34, %v492_v28  ;;  %v501_v39 = vshll.u32 %v703_v37, %v492_v28 }
 0x103   :  { %v504_v42 = vshll.u32 %v704_v40, %v492_v28  ;;  %v507_v45 = vshll.u32 %v705_v43, %v492_v28  ;;  %vm510_vm4 = vcmp.lt.s32.totalorder %v491_v31, 1  ;;  %vm513_vm5 = vcmp.lt.s32.totalorder %v491_v31, 4 }
 0x104   :  { %v496_v36 = vshrl.u32 %v702_v34, %v493_v30  ;;  %v499_v38 = vshrl.u32 %v703_v37, %v493_v30  ;;  %v502_v41 = vshrl.u32 %v704_v40, %v493_v30  ;;  %v505_v44 = vshrl.u32 %v705_v43, %v493_v30 }
 0x105   :  { %v508_v47 = vshrl.u32 %v706_v46, %v493_v30  ;;  %v494_v57 = vshrl.u32 %v701_v32, %v493_v30  ;;  %vm512_vm6 = vcmp.lt.s32.totalorder %v491_v31, 3  ;;  %vm511_vm7 = vcmp.lt.s32.totalorder %v491_v31, 2 }
 0x106   :  { %v497_v49 = vor.u32 %v496_v36, %v495_v33  ;;  %v500_v50 = vor.u32 %v499_v38, %v498_v35  ;;  %v503_v51 = vor.u32 %v502_v41, %v501_v39  ;;  %v506_v52 = vor.u32 %v505_v44, %v504_v42 }
 0x107   :  { %v509_v53 = vor.u32 %v508_v47, %v507_v45 }
 0x108   :  { %v515_v54 = vsel %vm513_vm5, %v503_v51, 2102212464  ;;  %v518_v55 = vsel %vm510_vm4, %v497_v49, %v500_v50  ;;  %v522_v56 = vsel %vm510_vm4, %v500_v50, %v503_v51  ;;  %v519_v58 = vsel %vm513_vm5, %v506_v52, 920167782 }
 0x109   :  { %v523_v59 = vsel %vm513_vm5, %v509_v53, 1326507024  ;;  %v520_v60 = vsel %vm512_vm6, %v503_v51, %v519_v58  ;;  %v514_v63 = vsel %vm510_vm4, %v494_v57, %v497_v49  ;;  %v516_v0 = vsel %vm512_vm6, %v500_v50, %v515_v54 }
 0x10a   :  { %v524_v61 = vsel %vm512_vm6, %v506_v52, %v523_v59  ;;  %v521_v1 = vsel %vm511_vm7, %v518_v55, %v520_v60  ;;  %v517_v7 = vsel %vm511_vm7, %v514_v63, %v516_v0 }
 0x10b   :  { %v525_v2 = vsel %vm511_vm7, %v522_v56, %v524_v61  ;;  %v754_v5 = vmul.u32.u64.low %v526_v62, %v521_v1  ;;  %v755_v6 = vmul.u32.u64.high %v526_v62, %v521_v1, %v754_v5  ;;  %v533_v9 = vmul.u32 %v526_v62, %v517_v7 }
 0x10c   :  { %v751_v3 = vmul.u32.u64.low %v526_v62, %v525_v2  ;;  %v752_v4 = vmul.u32.u64.high %v526_v62, %v525_v2, %v751_v3 }
 0x10d   :  { %v536_v8 = vadd.s32 1, %v755_v6 }
 0x10e   :  { %vm535_vm8 = vc.u32 %v752_v4, %v754_v5  ;;  %v534_v22 = vadd.s32 %v754_v5, %v752_v4 }
 0x10f   :  { %v537_v10 = vsel %vm535_vm8, %v536_v8, %v755_v6 }
 0x110   :  { %v538_v11 = vadd.s32 %v537_v10, %v533_v9 }
 0x112   :  { %v539_v12 = vadd.s32 536870912, %v538_v11 }
 0x114   :  { %v540_v13 = vshrl.u32 %v539_v12, 30 }
 0x116   :  { %v541_v14 = vshll.u32 %v540_v13, 30  ;;  %v564_v35 = vsub.s32 4, %v540_v13 }
 0x118   :  { %v542_v15 = vsub.s32 %v538_v11, %v541_v14  ;;  %v565_v38 = vsel %vm480_vm10, %v564_v35, %v540_v13 }
 0x119   :  { %v567_v40 = vsel %vm479_vm11, 0, %v565_v38 }
 0x11a   :  { %v544_v16 = vsub.s32 0, %v542_v15  ;;  %v571_v41 = vadd.s32 3, %v567_v40 }
 0x11c   :  { %v601_v17 = vmin.u32 %v544_v16, %v542_v15  ;;  %v572_v42 = vand.u32 3, %v571_v41 }
 0x11e   :  { %v546_v18 = vclz %v601_v17  ;;  %vm577_vm12 = vcmp.eq.s32.totalorder %v572_v42, 2  ;;  %vm574_vm13 = vcmp.eq.s32.totalorder %v572_v42, 0  ;;  %vm573_vm14 = vcmp.lt.s32.totalorder %v572_v42, 2 }
 0x120   :  { %v602_v19 = vadd.s32 4294967294, %v546_v18 }
 0x122   :  { %vm603_vm9 = vcmp.lt.s32.totalorder %v602_v19, 0 }
 0x123   :  { %v549_v20 = vsel %vm603_vm9, 0, %v602_v19 }
 0x124   :  { %v550_v23 = vsub.s32 32, %v549_v20  ;;  %v554_v24 = vsub.s32 4294967266, %v549_v20  ;;  %v551_v25 = vshll.u32 %v542_v15, %v549_v20 }
 0x126   :  { %v552_v27 = vshrl.u32 %v534_v22, %v550_v23  ;;  %v555_v28 = vadd.s32 127, %v554_v24 }
 0x128   :  { %v553_v29 = vor.u32 %v552_v27, %v551_v25  ;;  %v556_v30 = vshll.u32 %v555_v28, 23 }
 0x12a   :  { %v557_v31 = vor.u32 4788187, %v556_v30  ;;  %v560_v33 = vcvt.s32.f32 %v553_v29 }
 0x12c   :  { %v558_v32 = vand.u32 2147483647, %v557_v31 }
 0x12e   :  { %v561_v34 = vmul.f32 %v560_v33, %v558_v32 }
 0x130   :  { %v562_v36 = vxor.u32 2147483648, %v561_v34 }
 0x132   :  { %v563_v37 = vsel %vm480_vm10, %v562_v36, %v561_v34 }
 0x133   :  { %v566_v39 = vsel %vm479_vm11, %v745_v21, %v563_v37 }
 0x134   :  { %671 = vcosq.f32 %v566_v39 }
 0x135   :  { %673 = vsinq.f32 %v566_v39 }
 0x13e   :  { %v672_v43 = vpop.eup %671 }
 0x13f   :  { %v674_v44 = vpop.eup %673  ;;  %v578_v45 = vxor.u32 2147483648, %v672_v43 }
 0x140   :  { %v575_v46 = vxor.u32 2147483648, %v674_v44 }
 0x141   :  { %v579_v47 = vsel %vm577_vm12, %v578_v45, %v674_v44 }
 0x142   :  { %v576_v48 = vsel %vm574_vm13, %v672_v43, %v575_v46 }
 0x143   :  { %v580_v26 = vsel %vm573_vm14, %v576_v48, %v579_v47 }
 0x144   :  { %v581_v49 = vsel %vm570_vm15, nan, %v580_v26 }
 0x145   :  { %582 = vst [vmem:[#allocation2] sm:$0xff] %v581_v49 }
 0x146   :  { %587 = vsyncadd [#allocation3], 64  ;;  %s707_s2 = smov [#allocation2]  }
 0x147   :  { %s588_s16 = sshll.u32 %s707_s2, 4  ;;  %s589_s16 = int_to_ptr.vmem [resolvable:$true] %s588_s16 }
 0x148   :  { %s675_s17 = scalar_lea.vmem %s589_s16, 64  ;;  %s679_s18 = scalar_lea.vmem %s589_s16, 128 }
 0x149   :  { %p676_p0 = scmp.ne.s32.totalorder %s589_s16, %s675_s17  ;;  %p680_p1 = scmp.lt.s32.totalorder %s589_s16, %s589_s16 }
 0x14a   :  { %p681_p2 = scmp.lt.s32.totalorder %s679_s18, %s675_s17 }
 0x14c   :  { %p682_p3 = por %p681_p2, %p680_p1 }
 0x14e   :  { %p683_p4 = pnand %p682_p3, %p676_p0 }
 0x150   :  { %686 = shalt.err (!%p683_p4)
}
 0x151   :  { %s687_s21 = scalar_lea.hbm %s781_s3, 64 }
 0x152   :  { %p688_p5 = scmp.ne.s32.totalorder %s781_s3, %s687_s21  ;;  %p691_p6 = scmp.lt.u32.totalorder %s687_s21, %s781_s3 }
 0x154   :  { %p693_p7 = pnand %p691_p6, %p688_p5 }
 0x156   :  { %696 = shalt.err (!%p693_p7)
}
 0x157   :  { %s708_s26 = smov 64   ;;  %s709_s27 = smov 4  }
 0x158   :  { %594 = dma.vmem_to_hbm [thread:$0]  %s589_s16, 64, %s781_s3, [#allocation3], %s708_s26, %s708_s26, %s709_s27  }
 0x159   :  { %697 = dma.done.wait [#allocation3], 128  }
 0x15a   :  { %698 = vsyncadd [#allocation3], 4294967168 }
 0x15b   :  { %598 = vsyncpa [#allocation3], 1 }

</bundles_post_ra>
